<compile_context>
chip_gen: v5e
topology: v5e:2x2
jax: 0.10.0
libtpu: 0.0.40
codegen_flags: <defaults>
</compile_context>

<pallas_src>
import functools

import jax
import jax.numpy as jnp
from jax.experimental import pallas as pl
from jax.experimental.pallas import tpu as pltpu


def _round_up(x, m):
    return (x + m - 1) // m * m


def _colorgen_kernel(x_ref, w1_ref, b1_ref, wh_ref, bh_ref,
                     samp_ref, sel_ref, *, n_samp_p):
    # hidden = relu(x @ W1 + b1): bf16 operands, f32 MXU accumulation.
    h = jnp.dot(x_ref[...], w1_ref[...], preferred_element_type=jnp.float32)
    h = jnp.maximum(h + b1_ref[...], 0.0)          # f32 VPU (v5e-safe)

    # Single fused head matmul over [W_sampling | W_selection].
    out = jnp.dot(h.astype(wh_ref.dtype), wh_ref[...],
                  preferred_element_type=jnp.float32)
    out = out + bh_ref[...]

    # Lane-aligned split: both head widths are padded to multiples of 128.
    samp_ref[...] = out[:, :n_samp_p].astype(samp_ref.dtype)
    sel_ref[...] = out[:, n_samp_p:].astype(sel_ref.dtype)


def colorgen_forward(x, params, *, block_m=256, compute_dtype=jnp.bfloat16):
    """x: (B, ...) -> flattened to (B, dim_in) like x.view(B, -1).

    Returns (col_sampling, col_selection), both f32.
    """
    B = x.shape[0]
    x2d = x.reshape(B, -1).astype(jnp.float32)
    D = x2d.shape[1]

    w1, b1 = params["w1"], params["b1"]            # (D, H),  (1, H)
    ws, bs = params["w_samp"], params["b_samp"]    # (H, Ns), (1, Ns)
    wc, bc = params["w_sel"], params["b_sel"]      # (H, Nl), (1, Nl)
    H = w1.shape[1]
    Ns, Nsel = ws.shape[1], wc.shape[1]

    # ---- pad everything to (8, 128) tile boundaries -------------------------
    Dp = _round_up(D, 128)
    Hp = _round_up(H, 128)
    Ns_p = _round_up(Ns, 128)
    Nsel_p = _round_up(Nsel, 128)
    Ntot = Ns_p + Nsel_p

    if B <= block_m:                       # single grid step
        tm = _round_up(B, 8)
        Bp = tm
    else:                                  # batch-tiled grid
        tm = block_m
        Bp = _round_up(B, tm)

    def pad2(a, rows, cols):
        return jnp.pad(a, ((0, rows - a.shape[0]), (0, cols - a.shape[1])))

    x_p = pad2(x2d, Bp, Dp).astype(compute_dtype)
    w1_p = pad2(w1, Dp, Hp).astype(compute_dtype)
    b1_p = pad2(b1, 1, Hp).astype(jnp.float32)
    # Merge the two heads on the output axis; per-head padding keeps the
    # in-kernel split lane aligned.
    wh = jnp.concatenate([pad2(ws, Hp, Ns_p), pad2(wc, Hp, Nsel_p)],
                         axis=1).astype(compute_dtype)
    bh = jnp.concatenate([pad2(bs, 1, Ns_p), pad2(bc, 1, Nsel_p)],
                         axis=1).astype(jnp.float32)

    grid = (Bp // tm,)

    # ---- compiler hints ------------------------------------------------------
    itemsize_c = jnp.dtype(compute_dtype).itemsize
    weight_bytes = (w1_p.size * itemsize_c + wh.size * itemsize_c
                    + b1_p.size * 4 + bh.size * 4)
    io_bytes = (Bp * Dp * itemsize_c        # x
                + weight_bytes
                + Bp * Ntot * 4)            # outputs
    cost = pl.CostEstimate(
        flops=2 * Bp * (Dp * Hp + Hp * Ntot),
        bytes_accessed=int(io_bytes),
        transcendentals=0,
    )

    # Rough VMEM footprint: double-buffered per-step tiles + resident weights
    # + in-kernel f32 temporaries.  Cap below v7x's 64 MiB physical VMEM.
    # TODO(synk): for very large im_size*Nd (w_samp >> VMEM on v7x), add an
    # N-tiled grid axis over the sampling head instead of relying on the cap.
    vmem_bytes = (2 * (tm * Dp * itemsize_c + tm * Ntot * 4)
                  + weight_bytes
                  + tm * Hp * 4 + tm * Ntot * 4)
    vmem_limit = int(min(max(2 * vmem_bytes, 16 * 2**20), 60 * 2**20))

    kernel = functools.partial(_colorgen_kernel, n_samp_p=Ns_p)

    samp_p, sel_p = pl.pallas_call(
        kernel,
        out_shape=(
            jax.ShapeDtypeStruct((Bp, Ns_p), jnp.float32),
            jax.ShapeDtypeStruct((Bp, Nsel_p), jnp.float32),
        ),
        grid_spec=pltpu.PrefetchScalarGridSpec(
            num_scalar_prefetch=0,
            grid=grid,
            in_specs=[
                pl.BlockSpec((tm, Dp), lambda i: (i, 0)),     # x tile
                pl.BlockSpec((Dp, Hp), lambda i: (0, 0)),     # W1 (resident)
                pl.BlockSpec((1, Hp), lambda i: (0, 0)),      # b1
                pl.BlockSpec((Hp, Ntot), lambda i: (0, 0)),   # merged heads W
                pl.BlockSpec((1, Ntot), lambda i: (0, 0)),    # merged heads b
            ],
            out_specs=(
                pl.BlockSpec((tm, Ns_p), lambda i: (i, 0)),
                pl.BlockSpec((tm, Nsel_p), lambda i: (i, 0)),
            ),
        ),
        compiler_params=pltpu.CompilerParams(
            dimension_semantics=("parallel",),
            vmem_limit_bytes=vmem_limit,
        ),
        cost_estimate=cost,
    )(x_p, w1_p, b1_p, wh, bh)

    return samp_p[:B, :Ns], sel_p[:B, :Nsel]


def init_colorgen_params(key, dim_in, hidden, im_size, Nd, Nc):
    """Deterministic synthetic parameters (PyTorch Linear shapes, transposed)."""
    n_samp = im_size[0] * im_size[1] * Nd
    n_sel = Nd * Nc
    k1, k2, k3, k4, k5, k6 = jax.random.split(key, 6)
    scale = 0.02
    return {
        "w1":     scale * jax.random.normal(k1, (dim_in, hidden), jnp.float32),
        "b1":     scale * jax.random.normal(k2, (1, hidden), jnp.float32),
        "w_samp": scale * jax.random.normal(k3, (hidden, n_samp), jnp.float32),
        "b_samp": scale * jax.random.normal(k4, (1, n_samp), jnp.float32),
        "w_sel":  scale * jax.random.normal(k5, (hidden, n_sel), jnp.float32),
        "b_sel":  scale * jax.random.normal(k6, (1, n_sel), jnp.float32),
    }


def colorgen_reference(x, params):
    """Pure-JAX f32 reference matching the PyTorch forward."""
    B = x.shape[0]
    x2d = x.reshape(B, -1).astype(jnp.float32)
    hi = jax.lax.Precision.HIGHEST
    h = jnp.maximum(
        jnp.matmul(x2d, params["w1"], precision=hi) + params["b1"], 0.0)
    col_selection = jnp.matmul(h, params["w_sel"], precision=hi) + params["b_sel"]
    col_sampling = jnp.matmul(h, params["w_samp"], precision=hi) + params["b_samp"]
    return col_sampling, col_selection


if __name__ == "__main__":
    # Small shapes consistent with the module's structure:
    #   dim_in=64 (from a (2,4,4,4) input flattened), hidden=128,
    #   im_size=[8,8], Nd=4, Nc=32 -> sampling dim = 256, selection dim = 128.
    B = 2
    dim_in = 64
    hidden = 128
    im_size = [8, 8]
    Nd = 4
    Nc = 32

    key = jax.random.PRNGKey(0)
    kx, kp = jax.random.split(key)
    x = jax.random.normal(kx, (B, 4, 4, 4), jnp.float32)   # flattened -> (2, 64)
    params = init_colorgen_params(kp, dim_in, hidden, im_size, Nd, Nc)

    fwd = jax.jit(colorgen_forward)
    samp, sel = fwd(x, params)
    jax.block_until_ready((samp, sel))

    # Correctness vs. the pure-JAX f32 reference of the PyTorch forward.
    # Tolerance accounts for bf16 MXU operands with f32 accumulation.
    ref_samp, ref_sel = colorgen_reference(x, params)
    assert samp.shape == (B, im_size[0] * im_size[1] * Nd)
    assert sel.shape == (B, Nd * Nc)
    assert jnp.allclose(samp, ref_samp, atol=2e-3, rtol=2e-2), (
        float(jnp.max(jnp.abs(samp - ref_samp))))
    assert jnp.allclose(sel, ref_sel, atol=2e-3, rtol=2e-2), (
        float(jnp.max(jnp.abs(sel - ref_sel))))

    print("KERNEL_OK")
</pallas_src>

<mosaic_0001>
module attributes {stable_mosaic.version = 11 : i64} {
  func.func @_colorgen_kernel(%arg0: i32, %arg1: memref<8x128xbf16, #tpu.memory_space<vmem>>, %arg2: memref<128x128xbf16, #tpu.memory_space<vmem>>, %arg3: memref<1x128xf32, #tpu.memory_space<vmem>>, %arg4: memref<128x384xbf16, #tpu.memory_space<vmem>>, %arg5: memref<1x384xf32, #tpu.memory_space<vmem>>, %arg6: memref<8x256xf32, #tpu.memory_space<vmem>>, %arg7: memref<8x128xf32, #tpu.memory_space<vmem>>) attributes {dimension_semantics = [#tpu.dimension_semantics<parallel>], iteration_bounds = array<i64: 1>, scalar_prefetch = 0 : i64, scratch_operands = 0 : i64, tpu.core_type = #tpu.core_type<tc>, window_params = [{transform_indices = @transform_0, window_bounds = array<i64: 8, 128>}, {pipeline_mode = #tpu.pipeline_mode<synchronous>, transform_indices = @transform_1, window_bounds = array<i64: 128, 128>}, {pipeline_mode = #tpu.pipeline_mode<synchronous>, transform_indices = @transform_2, window_bounds = array<i64: 1, 128>}, {pipeline_mode = #tpu.pipeline_mode<synchronous>, transform_indices = @transform_3, window_bounds = array<i64: 128, 384>}, {pipeline_mode = #tpu.pipeline_mode<synchronous>, transform_indices = @transform_4, window_bounds = array<i64: 1, 384>}, {transform_indices = @transform_5, window_bounds = array<i64: 8, 256>}, {transform_indices = @transform_6, window_bounds = array<i64: 8, 128>}]} {
    %c0 = arith.constant 0 : index
    %c0_0 = arith.constant 0 : index
    %0 = vector.load %arg1[%c0, %c0_0] : memref<8x128xbf16, #tpu.memory_space<vmem>>, vector<8x128xbf16>
    %c0_1 = arith.constant 0 : index
    %c0_2 = arith.constant 0 : index
    %1 = vector.load %arg2[%c0_1, %c0_2] : memref<128x128xbf16, #tpu.memory_space<vmem>>, vector<128x128xbf16>
    %cst = arith.constant dense<0.000000e+00> : vector<8x128xf32>
    %2 = tpu.matmul %0, %1, %cst {dimension_numbers = #tpu.dot_dimension_numbers<[1], [0], [0], [1], [0, 0, 1, 1], [], []>} : vector<8x128xbf16>, vector<128x128xbf16>, vector<8x128xf32> -> vector<8x128xf32>
    %c0_3 = arith.constant 0 : index
    %c0_4 = arith.constant 0 : index
    %3 = vector.load %arg3[%c0_3, %c0_4] : memref<1x128xf32, #tpu.memory_space<vmem>>, vector<1x128xf32>
    %4 = vector.broadcast %3 : vector<1x128xf32> to vector<8x128xf32>
    %5 = arith.addf %2, %4 : vector<8x128xf32>
    %cst_5 = arith.constant 0.000000e+00 : f32
    %6 = vector.broadcast %cst_5 : f32 to vector<8x128xf32>
    %7 = arith.maximumf %5, %6 : vector<8x128xf32>
    %8 = arith.truncf %7 : vector<8x128xf32> to vector<8x128xbf16>
    %c0_6 = arith.constant 0 : index
    %c0_7 = arith.constant 0 : index
    %9 = vector.load %arg4[%c0_6, %c0_7] : memref<128x384xbf16, #tpu.memory_space<vmem>>, vector<128x384xbf16>
    %cst_8 = arith.constant dense<0.000000e+00> : vector<8x384xf32>
    %10 = tpu.matmul %8, %9, %cst_8 {dimension_numbers = #tpu.dot_dimension_numbers<[1], [0], [0], [1], [0, 0, 1, 1], [], []>} : vector<8x128xbf16>, vector<128x384xbf16>, vector<8x384xf32> -> vector<8x384xf32>
    %c0_9 = arith.constant 0 : index
    %c0_10 = arith.constant 0 : index
    %11 = vector.load %arg5[%c0_9, %c0_10] : memref<1x384xf32, #tpu.memory_space<vmem>>, vector<1x384xf32>
    %12 = vector.broadcast %11 : vector<1x384xf32> to vector<8x384xf32>
    %13 = arith.addf %10, %12 : vector<8x384xf32>
    %14 = vector.extract_strided_slice %13 {offsets = [0, 0], sizes = [8, 256], strides = [1, 1]} : vector<8x384xf32> to vector<8x256xf32>
    %c0_11 = arith.constant 0 : index
    %c0_12 = arith.constant 0 : index
    %15 = vector.load %arg6[%c0_11, %c0_12] : memref<8x256xf32, #tpu.memory_space<vmem>>, vector<8x256xf32>
    tpu.vector_store %arg6[%c0_11, %c0_12], %14 {strides = array<i32>} : memref<8x256xf32, #tpu.memory_space<vmem>>, vector<8x256xf32>,
    %16 = vector.extract_strided_slice %13 {offsets = [0, 256], sizes = [8, 128], strides = [1, 1]} : vector<8x384xf32> to vector<8x128xf32>
    %c0_13 = arith.constant 0 : index
    %c0_14 = arith.constant 0 : index
    %17 = vector.load %arg7[%c0_13, %c0_14] : memref<8x128xf32, #tpu.memory_space<vmem>>, vector<8x128xf32>
    tpu.vector_store %arg7[%c0_13, %c0_14], %16 {strides = array<i32>} : memref<8x128xf32, #tpu.memory_space<vmem>>, vector<8x128xf32>,
    return
  }
  func.func @transform_0(%arg0: i32) -> (i32, i32) {
    %c0_i32 = arith.constant 0 : i32
    %c0_i32_0 = arith.constant 0 : i32
    return %arg0, %c0_i32 : i32, i32
  }
  func.func @transform_1(%arg0: i32) -> (i32, i32) {
    %c0_i32 = arith.constant 0 : i32
    %c0_i32_0 = arith.constant 0 : i32
    %c0_i32_1 = arith.constant 0 : i32
    return %c0_i32, %c0_i32_0 : i32, i32
  }
  func.func @transform_2(%arg0: i32) -> (i32, i32) {
    %c0_i32 = arith.constant 0 : i32
    %c0_i32_0 = arith.constant 0 : i32
    %c0_i32_1 = arith.constant 0 : i32
    return %c0_i32, %c0_i32_0 : i32, i32
  }
  func.func @transform_3(%arg0: i32) -> (i32, i32) {
    %c0_i32 = arith.constant 0 : i32
    %c0_i32_0 = arith.constant 0 : i32
    %c0_i32_1 = arith.constant 0 : i32
    return %c0_i32, %c0_i32_0 : i32, i32
  }
  func.func @transform_4(%arg0: i32) -> (i32, i32) {
    %c0_i32 = arith.constant 0 : i32
    %c0_i32_0 = arith.constant 0 : i32
    %c0_i32_1 = arith.constant 0 : i32
    return %c0_i32, %c0_i32_0 : i32, i32
  }
  func.func @transform_5(%arg0: i32) -> (i32, i32) {
    %c0_i32 = arith.constant 0 : i32
    %c0_i32_0 = arith.constant 0 : i32
    return %arg0, %c0_i32 : i32, i32
  }
  func.func @transform_6(%arg0: i32) -> (i32, i32) {
    %c0_i32 = arith.constant 0 : i32
    %c0_i32_0 = arith.constant 0 : i32
    return %arg0, %c0_i32 : i32, i32
  }
}

</mosaic_0001>

<bundles_post_ra>
// kernel: colorgen_forward.1
= control target key start
LH: loop header
LB: loop body
LE: loop exit
PB: predicated region body
PF: predicated region fallthrough
CT: control target
= control target key end

     0   :  { %s706_s1 = inlined_call_operand.vmem [shape: bf16[128,128], index: 1, kind: input, shape index: {}]   ;;  %s707_s3 = inlined_call_operand.vmem [shape: bf16[128,384], index: 3, kind: input, shape index: {}]   ;;  %s708_s2 = inlined_call_operand.vmem [shape: f32[1,128], index: 2, kind: input, shape index: {}]   ;;  %s709_s0 = inlined_call_operand.vmem [shape: bf16[8,128], index: 0, kind: input, shape index: {}]   ;;  %s710_s4 = inlined_call_operand.vmem [shape: f32[1,384], index: 4, kind: input, shape index: {}]   ;;  %s711_s5 = inlined_call_operand.vmem [shape: f32[8,256], index: 5, kind: output, shape index: {0}]   ;;  %s712_s6 = inlined_call_operand.vmem [shape: f32[8,128], index: 6, kind: output, shape index: {1}]  }
   0x1   :  { %v459_v0 = vld [vmem:[%s706_s1 + $0x38] sm:$0xff]  ;;  %v458_v1 = vld [vmem:[%s706_s1 + $0x30] sm:$0xff]  ;;  %v442_v2 = vld [vmem:[%s707_s3 + $0xa8] sm:$0xf] }
   0x2   :  { %91 = vmatpush.bf16.msra.mxu0 %v459_v0  ;;  %v482_v3 = vld [vmem:[%s707_s3 + $0xb0] sm:$0xf0]  ;;  %v481_v4 = vld [vmem:[%s707_s3 + $0xac] sm:$0xf]  ;;  %v444_v7 = vld [vmem:[%s707_s3 + $0xb4] sm:$0xf0] }
   0x3   :  { %v457_v5 = vld [vmem:[%s706_s1 + $0x28] sm:$0xff]  ;;  %v443_v6 = vor.u32 %v482_v3, %v442_v2  ;;  %v450_v8 = vld [vmem:[%s707_s3 + $0xb0] sm:$0xf]  ;;  %v483_v9 = vld [vmem:[%s707_s3 + $0xb8] sm:$0xf0]  ;;  %v447_v10 = vor.u32 %v481_v4, %v444_v7 }
   0x4   :  { %v451_v11 = vor.u32 %v483_v9, %v450_v8  ;;  %v430_v12 = vld [vmem:[%s707_s3 + $0x90] sm:$0xf]  ;;  %v479_v13 = vld [vmem:[%s707_s3 + $0x98] sm:$0xf0]  ;;  %v478_v14 = vld [vmem:[%s707_s3 + $0x94] sm:$0xf] }
   0x5   :  { %274 = vmatpush.bf16.msra.mxu1 %v443_v6  ;;  %v431_v15 = vor.u32 %v479_v13, %v430_v12  ;;  %v432_v16 = vld [vmem:[%s707_s3 + $0x9c] sm:$0xf0]  ;;  %v438_v17 = vld [vmem:[%s707_s3 + $0x98] sm:$0xf]  ;;  %v480_v18 = vld [vmem:[%s707_s3 + $0xa0] sm:$0xf0]  ;;  %287 = vmatpush.bf16.msra.mxu2 %v447_v10 }
   0x6   :  { %92 = vmatpush.bf16.msra.mxu0 %v458_v1  ;;  %300 = vmatpush.bf16.msra.mxu3 %v451_v11  ;;  %v435_v19 = vor.u32 %v478_v14, %v432_v16  ;;  %v439_v20 = vor.u32 %v480_v18, %v438_v17  ;;  %v418_v21 = vld [vmem:[%s707_s3 + $0x78] sm:$0xf]  ;;  %v476_v22 = vld [vmem:[%s707_s3 + $0x80] sm:$0xf0]  ;;  %v475_v23 = vld [vmem:[%s707_s3 + $0x7c] sm:$0xf] }
   0x7   :  { %v420_v24 = vld [vmem:[%s707_s3 + $0x84] sm:$0xf0]  ;;  %v426_v25 = vld [vmem:[%s707_s3 + $0x80] sm:$0xf]  ;;  %v477_v26 = vld [vmem:[%s707_s3 + $0x88] sm:$0xf0]  ;;  %v419_v28 = vor.u32 %v476_v22, %v418_v21 }
   0x8   :  { %v456_v27 = vld [vmem:[%s706_s1 + $0x20] sm:$0xff]  ;;  %v423_v29 = vor.u32 %v475_v23, %v420_v24  ;;  %v427_v30 = vor.u32 %v477_v26, %v426_v25  ;;  %v473_v32 = vld [vmem:[%s707_s3 + $0x68] sm:$0xf0]  ;;  %v408_v34 = vld [vmem:[%s707_s3 + $0x6c] sm:$0xf0] }
   0x9   :  { %275 = vmatpush.bf16.msra.mxu1 %v431_v15  ;;  %288 = vmatpush.bf16.msra.mxu2 %v435_v19  ;;  %v406_v31 = vld [vmem:[%s707_s3 + $0x60] sm:$0xf]  ;;  %v472_v33 = vld [vmem:[%s707_s3 + $0x64] sm:$0xf]  ;;  %v414_v35 = vld [vmem:[%s707_s3 + $0x68] sm:$0xf] }
   0xa   :  { %93 = vmatpush.bf16.msra.mxu0 %v457_v5  ;;  %301 = vmatpush.bf16.msra.mxu3 %v439_v20  ;;  %v474_v36 = vld [vmem:[%s707_s3 + $0x70] sm:$0xf0]  ;;  %v455_v37 = vld [vmem:[%s706_s1 + $0x18] sm:$0xff]  ;;  %v407_v38 = vor.u32 %v473_v32, %v406_v31  ;;  %v394_v39 = vld [vmem:[%s707_s3 + $0x48] sm:$0xf]  ;;  %v411_v40 = vor.u32 %v472_v33, %v408_v34 }
   0xb   :  { %v415_v41 = vor.u32 %v474_v36, %v414_v35  ;;  %v470_v42 = vld [vmem:[%s707_s3 + $0x50] sm:$0xf0]  ;;  %v469_v43 = vld [vmem:[%s707_s3 + $0x4c] sm:$0xf]  ;;  %v396_v44 = vld [vmem:[%s707_s3 + $0x54] sm:$0xf0] }
   0xc   :  { %v402_v45 = vld [vmem:[%s707_s3 + $0x50] sm:$0xf]  ;;  %v471_v46 = vld [vmem:[%s707_s3 + $0x58] sm:$0xf0]  ;;  %v395_v48 = vor.u32 %v470_v42, %v394_v39  ;;  %v399_v49 = vor.u32 %v469_v43, %v396_v44  ;;  %v466_v53 = vld [vmem:[%s707_s3 + $0x34] sm:$0xf] }
   0xd   :  { %276 = vmatpush.bf16.msra.mxu1 %v419_v28  ;;  %289 = vmatpush.bf16.msra.mxu2 %v423_v29  ;;  %v454_v47 = vld [vmem:[%s706_s1 + $0x10] sm:$0xff]  ;;  %v403_v50 = vor.u32 %v471_v46, %v402_v45  ;;  %v467_v52 = vld [vmem:[%s707_s3 + $0x38] sm:$0xf0]  ;;  %v384_v54 = vld [vmem:[%s707_s3 + $0x3c] sm:$0xf0] }
   0xe   :  { %94 = vmatpush.bf16.msra.mxu0 %v456_v27  ;;  %302 = vmatpush.bf16.msra.mxu3 %v427_v30  ;;  %v382_v51 = vld [vmem:[%s707_s3 + $0x30] sm:$0xf]  ;;  %v390_v55 = vld [vmem:[%s707_s3 + $0x38] sm:$0xf]  ;;  %v468_v56 = vld [vmem:[%s707_s3 + $0x40] sm:$0xf0]  ;;  %v387_v59 = vor.u32 %v466_v53, %v384_v54 }
   0xf   :  { %v453_v57 = vld [vmem:[%s706_s1 + $0x8] sm:$0xff]  ;;  %v383_v58 = vor.u32 %v467_v52, %v382_v51  ;;  %v391_v60 = vor.u32 %v468_v56, %v390_v55  ;;  %v452_v61 = vld [vmem:[%s706_s1] sm:$0xff]  ;;  %v370_v63 = vld [vmem:[%s707_s3 + $0x18] sm:$0xf] }
  0x10   :  { %v22_v62 = vld [vmem:[%s709_s0] sm:$0xf]  ;;  %v464_v0 = vld [vmem:[%s707_s3 + $0x20] sm:$0xf0]  ;;  %v463_v1 = vld [vmem:[%s707_s3 + $0x1c] sm:$0xf] }
  0x11   :  { %277 = vmatpush.bf16.msra.mxu1 %v407_v38  ;;  %290 = vmatpush.bf16.msra.mxu2 %v411_v40  ;;  %v371_v2 = vor.u32 %v464_v0, %v370_v63  ;;  %v372_v3 = vld [vmem:[%s707_s3 + $0x24] sm:$0xf0]  ;;  %v378_v4 = vld [vmem:[%s707_s3 + $0x20] sm:$0xf]  ;;  %v465_v5 = vld [vmem:[%s707_s3 + $0x28] sm:$0xf0] }
  0x12   :  { %95 = vmatpush.bf16.msra.mxu0 %v455_v37  ;;  %303 = vmatpush.bf16.msra.mxu3 %v415_v41  ;;  %v375_v6 = vor.u32 %v463_v1, %v372_v3  ;;  %v379_v7 = vor.u32 %v465_v5, %v378_v4  ;;  %v358_v8 = vld [vmem:[%s707_s3] sm:$0xf]  ;;  %v461_v9 = vld [vmem:[%s707_s3 + $0x8] sm:$0xf0]  ;;  %v460_v10 = vld [vmem:[%s707_s3 + $0x4] sm:$0xf] }
  0x13   :  { %v359_v11 = vor.u32 %v461_v9, %v358_v8  ;;  %v360_v12 = vld [vmem:[%s707_s3 + $0xc] sm:$0xf0]  ;;  %v366_v13 = vld [vmem:[%s707_s3 + $0x8] sm:$0xf]  ;;  %v462_v14 = vld [vmem:[%s707_s3 + $0x10] sm:$0xf0] }
  0x14   :  { %v363_v15 = vor.u32 %v460_v10, %v360_v12  ;;  %v367_v16 = vor.u32 %v462_v14, %v366_v13  ;;  %v484_v17 = vld [vmem:[%s708_s2] ss:$0 sm:$0xff] }
  0x15   :  { %278 = vmatpush.bf16.msra.mxu1 %v395_v48  ;;  %291 = vmatpush.bf16.msra.mxu2 %v399_v49  ;;  %v138_v23 = vld [vmem:[%s710_s4] sm:$0x7] }
  0x16   :  { %96 = vmatpush.bf16.msra.mxu0 %v454_v47  ;;  %304 = vmatpush.bf16.msra.mxu3 %v403_v50  ;;  %v140_v24 = vperm.slane %v138_v23, 0  ;;  %v141_v27 = vperm.slane %v138_v23, 1  ;;  %v142_v28 = vperm.slane %v138_v23, 2 }
  0x19   :  { %279 = vmatpush.bf16.msra.mxu1 %v383_v58  ;;  %292 = vmatpush.bf16.msra.mxu2 %v387_v59 }
  0x1a   :  { %97 = vmatpush.bf16.msra.mxu0 %v453_v57  ;;  %305 = vmatpush.bf16.msra.mxu3 %v391_v60 }
  0x1d   :  { %280 = vmatpush.bf16.msra.mxu1 %v371_v2  ;;  %293 = vmatpush.bf16.msra.mxu2 %v375_v6 }
  0x1e   :  { %98 = vmatpush.bf16.msra.mxu0 %v452_v61  ;;  %306 = vmatpush.bf16.msra.mxu3 %v379_v7 }
  0x21   :  { %99 = vmatmul.bf16.vlgmr.msra.gmra.mxu0 %v22_v62  ;;  %281 = vmatpush.bf16.msra.mxu1 %v359_v11 }
  0x22   :  { %294 = vmatpush.bf16.msra.mxu2 %v363_v15  ;;  %307 = vmatpush.bf16.msra.mxu3 %v367_v16 }
  0x9e   :  { %v100_v18 = vpop.f32.mrf.mxu0 }
  0x9f   :  { %v101_v19 = vadd.f32 %v484_v17, %v100_v18 }
  0xa1   :  { %v104_v20 = vmax.f32 %v101_v19, 0.0 }
  0xa3   :  { %v105_v21 = vpack.c.bf16 %v104_v20, %v104_v20 }
  0xa5   :  { %282 = vmatmul.bf16.vlgmr.msra.gmra.mxu1 %v105_v21  ;;  %295 = vmatmul.bf16.vlgmr.msra.gmra.mxu2 %v105_v21 }
  0xa6   :  { %308 = vmatmul.bf16.vlgmr.msra.gmra.mxu3 %v105_v21  ;;  %v102_v22 = vpop.f32.mrf.mxu0 }
 0x122   :  { %v283_v25 = vpop.f32.mrf.mxu1 }
 0x123   :  { %v284_v26 = vadd.f32 %v283_v25, %v140_v24 }
 0x125   :  { %313 = vst [vmem:[%s711_s5] sm:$0xff] %v284_v26 }
 0x128   :  { %v296_v29 = vpop.f32.mrf.mxu2 }
 0x129   :  { %v297_v30 = vadd.f32 %v296_v29, %v141_v27  ;;  %v309_v31 = vpop.f32.mrf.mxu3 }
 0x12a   :  { %v310_v32 = vadd.f32 %v309_v31, %v142_v28  ;;  %v285_v33 = vpop.f32.mrf.mxu1 }
 0x12b   :  { %314 = vst [vmem:[%s711_s5 + $0x8] sm:$0xff] %v297_v30 }
 0x12c   :  { %315 = vst [vmem:[%s712_s6] sm:$0xff] %v310_v32 }
 0x130   :  { %v298_v34 = vpop.f32.mrf.mxu2 }
 0x131   :  { %v311_v35 = vpop.f32.mrf.mxu3 }

</bundles_post_ra>
